<compile_context>
chip_gen: v7x
topology: tpu7x:2x2x1
jax: 0.10.0
libtpu: 0.0.40
codegen_flags: <defaults>
</compile_context>

<pallas_src>
import jax
import jax.numpy as jnp
from jax import lax
from jax.experimental import pallas as pl
from jax.experimental.pallas import tpu as pltpu

HIDDEN_SIZE = 32
INPUT_SIZE = 1


def _rnn_fused_kernel(x_ref, h0_ref, whh_ref, wih_ref, bias_ref,
                      wout_ref, bout_ref, y_ref, hN_ref):
    # x_ref    : (T*B, 1) time-major input rows (row t*B + b == x[b, t, 0])
    # h0_ref   : (B, H)   initial hidden state
    # whh_ref  : (H, H)   W_hh^T
    # wih_ref  : (1, H)   W_ih^T row (INPUT_SIZE == 1)
    # bias_ref : (1, H)   fused bias b_ih + b_hh
    # wout_ref : (1, H)   W_out row
    # bout_ref : (1, 1)   b_out
    # y_ref    : (T*B, 1) output rows (row t*B + b == y[b, t, 0])
    # hN_ref   : (B, H)   final hidden state
    B, H = h0_ref.shape
    T = x_ref.shape[0] // B

    # Hoist all weights out of the loop — they stay resident in vregs.
    whh = whh_ref[...]
    wih = wih_ref[...]
    bias = bias_ref[...]
    wout = wout_ref[...]
    bout = bout_ref[...]

    def step(t, h):
        r = pl.multiple_of(t * B, B)
        x_t = x_ref[pl.ds(r, B), :]                      # (B, 1)
        # Fused input projection: broadcast FMA on the VPU (off the MXU chain).
        xproj = x_t * wih + bias                         # (B, H)
        # Serial chain: h @ W_hh^T (MXU) + add + tanh (EUP).
        h_new = jnp.tanh(
            xproj + jnp.dot(h, whh, preferred_element_type=jnp.float32)
        )
        # Fused output projection (does not feed the recurrence -> overlapped).
        y_t = jnp.sum(h_new * wout, axis=-1, keepdims=True) + bout   # (B, 1)
        y_ref[pl.ds(r, B), :] = y_t
        return h_new

    h_final = lax.fori_loop(0, T, step, h0_ref[...], unroll=min(T, 8))
    hN_ref[...] = h_final


def rnn_forward(x, h_state, params):
    """x: (B, T, 1) batch-first (PyTorch convention). h_state: (1, B, H) or None."""
    B, T, _ = x.shape
    H = HIDDEN_SIZE
    w_ih, w_hh, b_ih, b_hh, w_out, b_out = params
    f32 = jnp.float32

    if h_state is None:
        h0 = jnp.zeros((B, H), f32)
    else:
        h0 = h_state.reshape(B, H).astype(f32)

    # Layout prep only (no compute hoisting): time-major packed rows.
    x_tm = jnp.transpose(x.astype(f32), (1, 0, 2)).reshape(T * B, 1)
    wih_row = w_ih.reshape(1, H).astype(f32)             # (H,1) -> (1,H)
    bias_row = (b_ih + b_hh).reshape(1, H).astype(f32)
    whh_t = w_hh.T.astype(f32)                            # (H, H)
    wout_row = w_out.reshape(1, H).astype(f32)
    bout_2d = b_out.reshape(1, 1).astype(f32)

    vmem = pl.BlockSpec(memory_space=pltpu.MemorySpace.VMEM)
    y_flat, h_n = pl.pallas_call(
        _rnn_fused_kernel,
        out_shape=(
            jax.ShapeDtypeStruct((T * B, 1), f32),        # y, time-major rows
            jax.ShapeDtypeStruct((B, H), f32),            # final hidden state
        ),
        in_specs=[vmem] * 7,
        out_specs=(vmem, vmem),
    )(x_tm, h0, whh_t, wih_row, bias_row, wout_row, bout_2d)

    y = jnp.transpose(y_flat.reshape(T, B, 1), (1, 0, 2))  # back to (B, T, 1)
    h_state_out = h_n.reshape(1, B, H)                     # (num_layers, B, H)
    return y, h_state_out


rnn_forward_jit = jax.jit(rnn_forward)


def _reference_forward(x, h_state, params):
    """Pure-JAX reference of the PyTorch module for validation."""
    w_ih, w_hh, b_ih, b_hh, w_out, b_out = params
    B, T, _ = x.shape
    H = HIDDEN_SIZE
    h = jnp.zeros((B, H), jnp.float32) if h_state is None else h_state.reshape(B, H)

    def step(h, x_t):
        h_new = jnp.tanh(x_t @ w_ih.T + b_ih + h @ w_hh.T + b_hh)
        y_t = h_new @ w_out.T + b_out
        return h_new, y_t

    h_final, ys = lax.scan(step, h, jnp.transpose(x, (1, 0, 2)))
    return jnp.transpose(ys, (1, 0, 2)), h_final.reshape(1, B, H)


def init_params(key):
    H, I = HIDDEN_SIZE, INPUT_SIZE
    k = 1.0 / jnp.sqrt(jnp.float32(H))
    ks = jax.random.split(key, 6)
    w_ih = jax.random.uniform(ks[0], (H, I), jnp.float32, -k, k)
    w_hh = jax.random.uniform(ks[1], (H, H), jnp.float32, -k, k)
    b_ih = jax.random.uniform(ks[2], (H,), jnp.float32, -k, k)
    b_hh = jax.random.uniform(ks[3], (H,), jnp.float32, -k, k)
    w_out = jax.random.uniform(ks[4], (1, H), jnp.float32, -k, k)
    b_out = jax.random.uniform(ks[5], (1,), jnp.float32, -k, k)
    return (w_ih, w_hh, b_ih, b_hh, w_out, b_out)


if __name__ == "__main__":
    key = jax.random.PRNGKey(0)
    k_param, k_x = jax.random.split(key)
    params = init_params(k_param)

    B, T = 2, 8
    x = jax.random.normal(k_x, (B, T, INPUT_SIZE), jnp.float32)
    h_state = None  # matches the PyTorch script's global h_state = None

    y, h_n = rnn_forward_jit(x, h_state, params)
    y = jax.block_until_ready(y)
    h_n = jax.block_until_ready(h_n)

    y_ref, h_ref = _reference_forward(x, h_state, params)
    assert y.shape == (B, T, 1) and h_n.shape == (1, B, HIDDEN_SIZE)
    assert jnp.allclose(y, y_ref, atol=1e-5, rtol=1e-5)
    assert jnp.allclose(h_n, h_ref, atol=1e-5, rtol=1e-5)

    print("KERNEL_OK")
</pallas_src>

<mosaic_0001>
module attributes {stable_mosaic.version = 11 : i64} {
  func.func @_rnn_fused_kernel(%arg0: memref<16x1xf32, #tpu.memory_space<vmem>>, %arg1: memref<2x32xf32, #tpu.memory_space<vmem>>, %arg2: memref<32x32xf32, #tpu.memory_space<vmem>>, %arg3: memref<1x32xf32, #tpu.memory_space<vmem>>, %arg4: memref<1x32xf32, #tpu.memory_space<vmem>>, %arg5: memref<1x32xf32, #tpu.memory_space<vmem>>, %arg6: memref<1x1xf32, #tpu.memory_space<vmem>>, %arg7: memref<16x1xf32, #tpu.memory_space<vmem>>, %arg8: memref<2x32xf32, #tpu.memory_space<vmem>>) attributes {dimension_semantics = [], scalar_prefetch = 0 : i64, scratch_operands = 0 : i64, tpu.core_type = #tpu.core_type<tc>} {
    %c0 = arith.constant 0 : index
    %c0_0 = arith.constant 0 : index
    %0 = vector.load %arg2[%c0, %c0_0] : memref<32x32xf32, #tpu.memory_space<vmem>>, vector<32x32xf32>
    %c0_1 = arith.constant 0 : index
    %c0_2 = arith.constant 0 : index
    %1 = vector.load %arg3[%c0_1, %c0_2] : memref<1x32xf32, #tpu.memory_space<vmem>>, vector<1x32xf32>
    %c0_3 = arith.constant 0 : index
    %c0_4 = arith.constant 0 : index
    %2 = vector.load %arg4[%c0_3, %c0_4] : memref<1x32xf32, #tpu.memory_space<vmem>>, vector<1x32xf32>
    %c0_5 = arith.constant 0 : index
    %c0_6 = arith.constant 0 : index
    %3 = vector.load %arg5[%c0_5, %c0_6] : memref<1x32xf32, #tpu.memory_space<vmem>>, vector<1x32xf32>
    %c0_7 = arith.constant 0 : index
    %c0_8 = arith.constant 0 : index
    %4 = vector.load %arg6[%c0_7, %c0_8] : memref<1x1xf32, #tpu.memory_space<vmem>>, vector<1x1xf32>
    %c0_9 = arith.constant 0 : index
    %c0_10 = arith.constant 0 : index
    %5 = vector.load %arg1[%c0_9, %c0_10] : memref<2x32xf32, #tpu.memory_space<vmem>>, vector<2x32xf32>
    %c0_i32 = arith.constant 0 : i32
    %c2_i32 = arith.constant 2 : i32
    %6 = arith.muli %c0_i32, %c2_i32 : i32
    %7 = tpu.assume_multiple %6, 2 : i32
    %8 = arith.index_cast %7 : i32 to index
    %c0_11 = arith.constant 0 : index
    %9 = vector.load %arg0[%8, %c0_11] : memref<16x1xf32, #tpu.memory_space<vmem>>, vector<2x1xf32>
    %10 = vector.broadcast %9 : vector<2x1xf32> to vector<2x32xf32>
    %11 = vector.broadcast %1 : vector<1x32xf32> to vector<2x32xf32>
    %12 = arith.mulf %10, %11 : vector<2x32xf32>
    %13 = vector.broadcast %2 : vector<1x32xf32> to vector<2x32xf32>
    %14 = arith.addf %12, %13 : vector<2x32xf32>
    %cst = arith.constant dense<0.000000e+00> : vector<2x32xf32>
    %15 = tpu.matmul %5, %0, %cst {dimension_numbers = #tpu.dot_dimension_numbers<[1], [0], [0], [1], [0, 0, 1, 1], [], []>} : vector<2x32xf32>, vector<32x32xf32>, vector<2x32xf32> -> vector<2x32xf32>
    %16 = arith.addf %14, %15 : vector<2x32xf32>
    %17 = math.tanh %16 : vector<2x32xf32>
    %18 = vector.broadcast %3 : vector<1x32xf32> to vector<2x32xf32>
    %19 = arith.mulf %17, %18 : vector<2x32xf32>
    %cst_12 = arith.constant dense<0.000000e+00> : vector<2xf32>
    %20 = vector.multi_reduction <add>, %19, %cst_12 [1] : vector<2x32xf32> to vector<2xf32>
    %21 = vector.shape_cast %20 : vector<2xf32> to vector<2x1xf32>
    %22 = vector.broadcast %4 : vector<1x1xf32> to vector<2x1xf32>
    %23 = arith.addf %21, %22 : vector<2x1xf32>
    %24 = arith.index_cast %7 : i32 to index
    %c0_13 = arith.constant 0 : index
    %25 = vector.load %arg7[%24, %c0_13] : memref<16x1xf32, #tpu.memory_space<vmem>>, vector<2x1xf32>
    tpu.vector_store %arg7[%24, %c0_13], %23 {strides = array<i32>} : memref<16x1xf32, #tpu.memory_space<vmem>>, vector<2x1xf32>,
    %c1_i32 = arith.constant 1 : i32
    %c2_i32_14 = arith.constant 2 : i32
    %26 = arith.muli %c1_i32, %c2_i32_14 : i32
    %27 = tpu.assume_multiple %26, 2 : i32
    %28 = arith.index_cast %27 : i32 to index
    %c0_15 = arith.constant 0 : index
    %29 = vector.load %arg0[%28, %c0_15] : memref<16x1xf32, #tpu.memory_space<vmem>>, vector<2x1xf32>
    %30 = vector.broadcast %29 : vector<2x1xf32> to vector<2x32xf32>
    %31 = vector.broadcast %1 : vector<1x32xf32> to vector<2x32xf32>
    %32 = arith.mulf %30, %31 : vector<2x32xf32>
    %33 = vector.broadcast %2 : vector<1x32xf32> to vector<2x32xf32>
    %34 = arith.addf %32, %33 : vector<2x32xf32>
    %cst_16 = arith.constant dense<0.000000e+00> : vector<2x32xf32>
    %35 = tpu.matmul %17, %0, %cst_16 {dimension_numbers = #tpu.dot_dimension_numbers<[1], [0], [0], [1], [0, 0, 1, 1], [], []>} : vector<2x32xf32>, vector<32x32xf32>, vector<2x32xf32> -> vector<2x32xf32>
    %36 = arith.addf %34, %35 : vector<2x32xf32>
    %37 = math.tanh %36 : vector<2x32xf32>
    %38 = vector.broadcast %3 : vector<1x32xf32> to vector<2x32xf32>
    %39 = arith.mulf %37, %38 : vector<2x32xf32>
    %cst_17 = arith.constant dense<0.000000e+00> : vector<2xf32>
    %40 = vector.multi_reduction <add>, %39, %cst_17 [1] : vector<2x32xf32> to vector<2xf32>
    %41 = vector.shape_cast %40 : vector<2xf32> to vector<2x1xf32>
    %42 = vector.broadcast %4 : vector<1x1xf32> to vector<2x1xf32>
    %43 = arith.addf %41, %42 : vector<2x1xf32>
    %44 = arith.index_cast %27 : i32 to index
    %c0_18 = arith.constant 0 : index
    %45 = vector.load %arg7[%44, %c0_18] : memref<16x1xf32, #tpu.memory_space<vmem>>, vector<2x1xf32>
    tpu.vector_store %arg7[%44, %c0_18], %43 {strides = array<i32>} : memref<16x1xf32, #tpu.memory_space<vmem>>, vector<2x1xf32>,
    %c2_i32_19 = arith.constant 2 : i32
    %c2_i32_20 = arith.constant 2 : i32
    %46 = arith.muli %c2_i32_19, %c2_i32_20 : i32
    %47 = tpu.assume_multiple %46, 2 : i32
    %48 = arith.index_cast %47 : i32 to index
    %c0_21 = arith.constant 0 : index
    %49 = vector.load %arg0[%48, %c0_21] : memref<16x1xf32, #tpu.memory_space<vmem>>, vector<2x1xf32>
    %50 = vector.broadcast %49 : vector<2x1xf32> to vector<2x32xf32>
    %51 = vector.broadcast %1 : vector<1x32xf32> to vector<2x32xf32>
    %52 = arith.mulf %50, %51 : vector<2x32xf32>
    %53 = vector.broadcast %2 : vector<1x32xf32> to vector<2x32xf32>
    %54 = arith.addf %52, %53 : vector<2x32xf32>
    %cst_22 = arith.constant dense<0.000000e+00> : vector<2x32xf32>
    %55 = tpu.matmul %37, %0, %cst_22 {dimension_numbers = #tpu.dot_dimension_numbers<[1], [0], [0], [1], [0, 0, 1, 1], [], []>} : vector<2x32xf32>, vector<32x32xf32>, vector<2x32xf32> -> vector<2x32xf32>
    %56 = arith.addf %54, %55 : vector<2x32xf32>
    %57 = math.tanh %56 : vector<2x32xf32>
    %58 = vector.broadcast %3 : vector<1x32xf32> to vector<2x32xf32>
    %59 = arith.mulf %57, %58 : vector<2x32xf32>
    %cst_23 = arith.constant dense<0.000000e+00> : vector<2xf32>
    %60 = vector.multi_reduction <add>, %59, %cst_23 [1] : vector<2x32xf32> to vector<2xf32>
    %61 = vector.shape_cast %60 : vector<2xf32> to vector<2x1xf32>
    %62 = vector.broadcast %4 : vector<1x1xf32> to vector<2x1xf32>
    %63 = arith.addf %61, %62 : vector<2x1xf32>
    %64 = arith.index_cast %47 : i32 to index
    %c0_24 = arith.constant 0 : index
    %65 = vector.load %arg7[%64, %c0_24] : memref<16x1xf32, #tpu.memory_space<vmem>>, vector<2x1xf32>
    tpu.vector_store %arg7[%64, %c0_24], %63 {strides = array<i32>} : memref<16x1xf32, #tpu.memory_space<vmem>>, vector<2x1xf32>,
    %c3_i32 = arith.constant 3 : i32
    %c2_i32_25 = arith.constant 2 : i32
    %66 = arith.muli %c3_i32, %c2_i32_25 : i32
    %67 = tpu.assume_multiple %66, 2 : i32
    %68 = arith.index_cast %67 : i32 to index
    %c0_26 = arith.constant 0 : index
    %69 = vector.load %arg0[%68, %c0_26] : memref<16x1xf32, #tpu.memory_space<vmem>>, vector<2x1xf32>
    %70 = vector.broadcast %69 : vector<2x1xf32> to vector<2x32xf32>
    %71 = vector.broadcast %1 : vector<1x32xf32> to vector<2x32xf32>
    %72 = arith.mulf %70, %71 : vector<2x32xf32>
    %73 = vector.broadcast %2 : vector<1x32xf32> to vector<2x32xf32>
    %74 = arith.addf %72, %73 : vector<2x32xf32>
    %cst_27 = arith.constant dense<0.000000e+00> : vector<2x32xf32>
    %75 = tpu.matmul %57, %0, %cst_27 {dimension_numbers = #tpu.dot_dimension_numbers<[1], [0], [0], [1], [0, 0, 1, 1], [], []>} : vector<2x32xf32>, vector<32x32xf32>, vector<2x32xf32> -> vector<2x32xf32>
    %76 = arith.addf %74, %75 : vector<2x32xf32>
    %77 = math.tanh %76 : vector<2x32xf32>
    %78 = vector.broadcast %3 : vector<1x32xf32> to vector<2x32xf32>
    %79 = arith.mulf %77, %78 : vector<2x32xf32>
    %cst_28 = arith.constant dense<0.000000e+00> : vector<2xf32>
    %80 = vector.multi_reduction <add>, %79, %cst_28 [1] : vector<2x32xf32> to vector<2xf32>
    %81 = vector.shape_cast %80 : vector<2xf32> to vector<2x1xf32>
    %82 = vector.broadcast %4 : vector<1x1xf32> to vector<2x1xf32>
    %83 = arith.addf %81, %82 : vector<2x1xf32>
    %84 = arith.index_cast %67 : i32 to index
    %c0_29 = arith.constant 0 : index
    %85 = vector.load %arg7[%84, %c0_29] : memref<16x1xf32, #tpu.memory_space<vmem>>, vector<2x1xf32>
    tpu.vector_store %arg7[%84, %c0_29], %83 {strides = array<i32>} : memref<16x1xf32, #tpu.memory_space<vmem>>, vector<2x1xf32>,
    %c4_i32 = arith.constant 4 : i32
    %c2_i32_30 = arith.constant 2 : i32
    %86 = arith.muli %c4_i32, %c2_i32_30 : i32
    %87 = tpu.assume_multiple %86, 2 : i32
    %88 = arith.index_cast %87 : i32 to index
    %c0_31 = arith.constant 0 : index
    %89 = vector.load %arg0[%88, %c0_31] : memref<16x1xf32, #tpu.memory_space<vmem>>, vector<2x1xf32>
    %90 = vector.broadcast %89 : vector<2x1xf32> to vector<2x32xf32>
    %91 = vector.broadcast %1 : vector<1x32xf32> to vector<2x32xf32>
    %92 = arith.mulf %90, %91 : vector<2x32xf32>
    %93 = vector.broadcast %2 : vector<1x32xf32> to vector<2x32xf32>
    %94 = arith.addf %92, %93 : vector<2x32xf32>
    %cst_32 = arith.constant dense<0.000000e+00> : vector<2x32xf32>
    %95 = tpu.matmul %77, %0, %cst_32 {dimension_numbers = #tpu.dot_dimension_numbers<[1], [0], [0], [1], [0, 0, 1, 1], [], []>} : vector<2x32xf32>, vector<32x32xf32>, vector<2x32xf32> -> vector<2x32xf32>
    %96 = arith.addf %94, %95 : vector<2x32xf32>
    %97 = math.tanh %96 : vector<2x32xf32>
    %98 = vector.broadcast %3 : vector<1x32xf32> to vector<2x32xf32>
    %99 = arith.mulf %97, %98 : vector<2x32xf32>
    %cst_33 = arith.constant dense<0.000000e+00> : vector<2xf32>
    %100 = vector.multi_reduction <add>, %99, %cst_33 [1] : vector<2x32xf32> to vector<2xf32>
    %101 = vector.shape_cast %100 : vector<2xf32> to vector<2x1xf32>
    %102 = vector.broadcast %4 : vector<1x1xf32> to vector<2x1xf32>
    %103 = arith.addf %101, %102 : vector<2x1xf32>
    %104 = arith.index_cast %87 : i32 to index
    %c0_34 = arith.constant 0 : index
    %105 = vector.load %arg7[%104, %c0_34] : memref<16x1xf32, #tpu.memory_space<vmem>>, vector<2x1xf32>
    tpu.vector_store %arg7[%104, %c0_34], %103 {strides = array<i32>} : memref<16x1xf32, #tpu.memory_space<vmem>>, vector<2x1xf32>,
    %c5_i32 = arith.constant 5 : i32
    %c2_i32_35 = arith.constant 2 : i32
    %106 = arith.muli %c5_i32, %c2_i32_35 : i32
    %107 = tpu.assume_multiple %106, 2 : i32
    %108 = arith.index_cast %107 : i32 to index
    %c0_36 = arith.constant 0 : index
    %109 = vector.load %arg0[%108, %c0_36] : memref<16x1xf32, #tpu.memory_space<vmem>>, vector<2x1xf32>
    %110 = vector.broadcast %109 : vector<2x1xf32> to vector<2x32xf32>
    %111 = vector.broadcast %1 : vector<1x32xf32> to vector<2x32xf32>
    %112 = arith.mulf %110, %111 : vector<2x32xf32>
    %113 = vector.broadcast %2 : vector<1x32xf32> to vector<2x32xf32>
    %114 = arith.addf %112, %113 : vector<2x32xf32>
    %cst_37 = arith.constant dense<0.000000e+00> : vector<2x32xf32>
    %115 = tpu.matmul %97, %0, %cst_37 {dimension_numbers = #tpu.dot_dimension_numbers<[1], [0], [0], [1], [0, 0, 1, 1], [], []>} : vector<2x32xf32>, vector<32x32xf32>, vector<2x32xf32> -> vector<2x32xf32>
    %116 = arith.addf %114, %115 : vector<2x32xf32>
    %117 = math.tanh %116 : vector<2x32xf32>
    %118 = vector.broadcast %3 : vector<1x32xf32> to vector<2x32xf32>
    %119 = arith.mulf %117, %118 : vector<2x32xf32>
    %cst_38 = arith.constant dense<0.000000e+00> : vector<2xf32>
    %120 = vector.multi_reduction <add>, %119, %cst_38 [1] : vector<2x32xf32> to vector<2xf32>
    %121 = vector.shape_cast %120 : vector<2xf32> to vector<2x1xf32>
    %122 = vector.broadcast %4 : vector<1x1xf32> to vector<2x1xf32>
    %123 = arith.addf %121, %122 : vector<2x1xf32>
    %124 = arith.index_cast %107 : i32 to index
    %c0_39 = arith.constant 0 : index
    %125 = vector.load %arg7[%124, %c0_39] : memref<16x1xf32, #tpu.memory_space<vmem>>, vector<2x1xf32>
    tpu.vector_store %arg7[%124, %c0_39], %123 {strides = array<i32>} : memref<16x1xf32, #tpu.memory_space<vmem>>, vector<2x1xf32>,
    %c6_i32 = arith.constant 6 : i32
    %c2_i32_40 = arith.constant 2 : i32
    %126 = arith.muli %c6_i32, %c2_i32_40 : i32
    %127 = tpu.assume_multiple %126, 2 : i32
    %128 = arith.index_cast %127 : i32 to index
    %c0_41 = arith.constant 0 : index
    %129 = vector.load %arg0[%128, %c0_41] : memref<16x1xf32, #tpu.memory_space<vmem>>, vector<2x1xf32>
    %130 = vector.broadcast %129 : vector<2x1xf32> to vector<2x32xf32>
    %131 = vector.broadcast %1 : vector<1x32xf32> to vector<2x32xf32>
    %132 = arith.mulf %130, %131 : vector<2x32xf32>
    %133 = vector.broadcast %2 : vector<1x32xf32> to vector<2x32xf32>
    %134 = arith.addf %132, %133 : vector<2x32xf32>
    %cst_42 = arith.constant dense<0.000000e+00> : vector<2x32xf32>
    %135 = tpu.matmul %117, %0, %cst_42 {dimension_numbers = #tpu.dot_dimension_numbers<[1], [0], [0], [1], [0, 0, 1, 1], [], []>} : vector<2x32xf32>, vector<32x32xf32>, vector<2x32xf32> -> vector<2x32xf32>
    %136 = arith.addf %134, %135 : vector<2x32xf32>
    %137 = math.tanh %136 : vector<2x32xf32>
    %138 = vector.broadcast %3 : vector<1x32xf32> to vector<2x32xf32>
    %139 = arith.mulf %137, %138 : vector<2x32xf32>
    %cst_43 = arith.constant dense<0.000000e+00> : vector<2xf32>
    %140 = vector.multi_reduction <add>, %139, %cst_43 [1] : vector<2x32xf32> to vector<2xf32>
    %141 = vector.shape_cast %140 : vector<2xf32> to vector<2x1xf32>
    %142 = vector.broadcast %4 : vector<1x1xf32> to vector<2x1xf32>
    %143 = arith.addf %141, %142 : vector<2x1xf32>
    %144 = arith.index_cast %127 : i32 to index
    %c0_44 = arith.constant 0 : index
    %145 = vector.load %arg7[%144, %c0_44] : memref<16x1xf32, #tpu.memory_space<vmem>>, vector<2x1xf32>
    tpu.vector_store %arg7[%144, %c0_44], %143 {strides = array<i32>} : memref<16x1xf32, #tpu.memory_space<vmem>>, vector<2x1xf32>,
    %c7_i32 = arith.constant 7 : i32
    %c2_i32_45 = arith.constant 2 : i32
    %146 = arith.muli %c7_i32, %c2_i32_45 : i32
    %147 = tpu.assume_multiple %146, 2 : i32
    %148 = arith.index_cast %147 : i32 to index
    %c0_46 = arith.constant 0 : index
    %149 = vector.load %arg0[%148, %c0_46] : memref<16x1xf32, #tpu.memory_space<vmem>>, vector<2x1xf32>
    %150 = vector.broadcast %149 : vector<2x1xf32> to vector<2x32xf32>
    %151 = vector.broadcast %1 : vector<1x32xf32> to vector<2x32xf32>
    %152 = arith.mulf %150, %151 : vector<2x32xf32>
    %153 = vector.broadcast %2 : vector<1x32xf32> to vector<2x32xf32>
    %154 = arith.addf %152, %153 : vector<2x32xf32>
    %cst_47 = arith.constant dense<0.000000e+00> : vector<2x32xf32>
    %155 = tpu.matmul %137, %0, %cst_47 {dimension_numbers = #tpu.dot_dimension_numbers<[1], [0], [0], [1], [0, 0, 1, 1], [], []>} : vector<2x32xf32>, vector<32x32xf32>, vector<2x32xf32> -> vector<2x32xf32>
    %156 = arith.addf %154, %155 : vector<2x32xf32>
    %157 = math.tanh %156 : vector<2x32xf32>
    %158 = vector.broadcast %3 : vector<1x32xf32> to vector<2x32xf32>
    %159 = arith.mulf %157, %158 : vector<2x32xf32>
    %cst_48 = arith.constant dense<0.000000e+00> : vector<2xf32>
    %160 = vector.multi_reduction <add>, %159, %cst_48 [1] : vector<2x32xf32> to vector<2xf32>
    %161 = vector.shape_cast %160 : vector<2xf32> to vector<2x1xf32>
    %162 = vector.broadcast %4 : vector<1x1xf32> to vector<2x1xf32>
    %163 = arith.addf %161, %162 : vector<2x1xf32>
    %164 = arith.index_cast %147 : i32 to index
    %c0_49 = arith.constant 0 : index
    %165 = vector.load %arg7[%164, %c0_49] : memref<16x1xf32, #tpu.memory_space<vmem>>, vector<2x1xf32>
    tpu.vector_store %arg7[%164, %c0_49], %163 {strides = array<i32>} : memref<16x1xf32, #tpu.memory_space<vmem>>, vector<2x1xf32>,
    %c8_i32 = arith.constant 8 : i32
    %c0_50 = arith.constant 0 : index
    %c0_51 = arith.constant 0 : index
    %166 = vector.load %arg8[%c0_50, %c0_51] : memref<2x32xf32, #tpu.memory_space<vmem>>, vector<2x32xf32>
    tpu.vector_store %arg8[%c0_50, %c0_51], %157 {strides = array<i32>} : memref<2x32xf32, #tpu.memory_space<vmem>>, vector<2x32xf32>,
    return
  }
}

</mosaic_0001>

<bundles_post_ra>
// kernel: rnn_forward.1
= control target key start
LH: loop header
LB: loop body
LE: loop exit
PB: predicated region body
PF: predicated region fallthrough
CT: control target
= control target key end

     0   :  { %s1321_s0 = inlined_call_operand.vmem [shape: f32[16,1], index: 0, kind: input, shape index: {}]   ;;  %s1322_s1 = inlined_call_operand.vmem [shape: f32[2,32], index: 1, kind: input, shape index: {}]   ;;  %s1323_s2 = inlined_call_operand.vmem [shape: f32[32,32], index: 2, kind: input, shape index: {}]   ;;  %s1324_s3 = inlined_call_operand.vmem [shape: f32[1,32], index: 3, kind: input, shape index: {}]   ;;  %s1325_s4 = inlined_call_operand.vmem [shape: f32[1,32], index: 4, kind: input, shape index: {}]   ;;  %s1326_s5 = inlined_call_operand.vmem [shape: f32[1,32], index: 5, kind: input, shape index: {}]   ;;  %s1327_s6 = inlined_call_operand.<no memory space> [shape: f32[1,1], index: 6, kind: input, shape index: {}]   ;;  %s1328_s7 = inlined_call_operand.vmem [shape: f32[16,1], index: 7, kind: output, shape index: {0}]   ;;  %s1329_s8 = inlined_call_operand.hbm [shape: f32[2,32], index: 8, kind: output, shape index: {1}]  }
   0x1   :  { %v14_v0 = vstv %s1327_s6 }
   0x2   :  { %15 = vst [vmem:[#allocation2] sm:$0x1] %v14_v0 }
   0x3   :  { %v31_v1 = vld [vmem:[%s1323_s2] sm:$0xff]  ;;  %v32_v2 = vld [vmem:[%s1323_s2 + $0x8] sm:$0xff]  ;;  %v33_v3 = vld [vmem:[%s1323_s2 + $0x10] sm:$0xff]  ;;  %v1061_v4 = vmov 0.0|0.0   ;;  %vm1062_vm0 = vmmov 0   ;;  %v1063_v7 = vmov 0.0  }
   0x4   :  { %966 = vmatprep.subr.bf16.mxu0 %v1061_v4  ;;  %v1124_v5 = vpack.c.bf16 %v32_v2, %v31_v1  ;;  %v34_v6 = vld [vmem:[%s1323_s2 + $0x18] sm:$0xff]  ;;  %886 = vmatprep.mubr.msk.f32.mxu0 %vm1062_vm0, %v1063_v7  ;;  %v1064_v8 = vmov 0   ;;  %v40_v9 = vld [vmem:[%s1321_s0] sm:$0x3]  ;;  %v820_v11 = vld [vmem:[%s1321_s0 + $0x4] sm:$0x3] }
   0x5   :  { %1019 = vset.pattern.permute.xlu0 %v1064_v8  ;;  %1020 = vset.pattern.permute.xlu1 %v1064_v8  ;;  %v1135_v10 = vpack.c.bf16 %v34_v6, %v33_v3  ;;  %v817_v12 = vld [vmem:[%s1321_s0 + $0x2] sm:$0x3] }
   0x6   :  { %968 = vmatpush3.bf16.msra.mxu0 %v1124_v5  ;;  %43 = vperm.xlu0 %1019, %v40_v9  }
   0x7   :  { %969 = vmatprep.subr.bf16.mxu0 %v1061_v4  ;;  %251 = vperm.xlu1 %1020, %v820_v11  }
   0x8   :  { %16 = vsyncpa [#allocation4], 0  ;;  %v823_v13 = vld [vmem:[%s1321_s0 + $0x6] sm:$0x3]  ;;  %972 = vmatprep.subr.bf16.mxu1 %v1061_v4  ;;  %897 = vmatprep.mubr.msk.f32.mxu1 %vm1062_vm0, %v1063_v7  ;;  %v39_v14 = vld [vmem:[%s1322_s1] sm:$0x3] }
   0x9   :  { %974 = vmatpush3.bf16.msra.mxu1 %v1124_v5  ;;  %vm60_vm1 = vcmask 261120   ;;  %v826_v15 = vld [vmem:[%s1321_s0 + $0x8] sm:$0x3]  ;;  %v829_v16 = vld [vmem:[%s1321_s0 + $0xa] sm:$0x3]  ;;  %vm143_vm2 = vcmask 254976  }
   0xa   :  { %971 = vmatpush3.bf16.msra.mxu0 %v1135_v10  ;;  %160 = vperm.xlu0 %1019, %v817_v12   ;;  %v832_v17 = vld [vmem:[%s1321_s0 + $0xc] sm:$0x3]  ;;  %v1178_v18 = vld [vmem:[%s1324_s3] ss:$0 sm:$0xff]  ;;  %vm154_vm3 = vcmask 1024   ;;  %s1065_s22 = smov [#allocation3]  }
   0xb   :  { %342 = vperm.xlu1 %1020, %v823_v13   ;;  %975 = vmatprep.subr.bf16.mxu1 %v1061_v4  ;;  %v1184_v21 = vld [vmem:[%s1325_s4] ss:$0 sm:$0xff]  ;;  %s802_s23 = sshll.u32 %s1065_s22, 4  ;;  %s803_s23 = int_to_ptr.vmem [resolvable:$true] %s802_s23 }
   0xc   :  { %978 = vmatprep.subr.bf16.mxu0 %v1061_v4  ;;  %v1190_v26 = vld [vmem:[%s1326_s5] ss:$0 sm:$0xff]  ;;  %s1037_s24 = scalar_lea.vmem %s803_s23, 32  ;;  %p1042_p1 = scmp.lt.s32.totalorder %s803_s23, %s803_s23 }
   0xd   :  { %887 = vmatmul.mubr.msk.f32.vlgmr.msra.gmra.mrb[0].mxu0 %vm60_vm1, %v39_v14  ;;  %977 = vmatpush3.bf16.msra.mxu1 %v1135_v10  ;;  %v1203_v33 = vld [vmem:[#allocation2] ss:$0 sm:$0xff]  ;;  %p1038_p0 = scmp.ne.s32.totalorder %s803_s23, %s1037_s24  ;;  %p1043_p2 = scmp.lt.s32.totalorder %s1037_s24, %s1037_s24 }
   0xe   :  { %433 = vperm.xlu0 %1019, %v826_v15   ;;  %980 = vmatpush3.bf16.msra.mxu0 %v1124_v5 }
   0xf   :  { %524 = vperm.xlu1 %1020, %v829_v16   ;;  %981 = vmatprep.subr.bf16.mxu0 %v1061_v4  ;;  %p1044_p3 = por %p1043_p2, %p1042_p1 }
  0x10   :  { %908 = vmatprep.mubr.msk.f32.mxu0 %vm1062_vm0, %v1063_v7  ;;  %984 = vmatprep.subr.bf16.mxu1 %v1061_v4 }
  0x11   :  { %p1045_p4 = pnand %p1044_p3, %p1038_p0 }
  0x12   :  { %615 = vperm.xlu0 %1019, %v832_v17   ;;  %983 = vmatpush3.bf16.msra.mxu0 %v1135_v10 }
  0x13   :  { %990 = vmatprep.subr.bf16.mxu0 %v1061_v4 }
  0x85   :  { %v44_v19 = vpop.permute.xlu0 %43 }
  0x86   :  { %v52_v20 = vmul.f32 %v1178_v18, %v44_v19  ;;  %v252_v30 = vpop.permute.xlu1 %251 }
  0x87   :  { %v254_v49 = vmul.f32 %v1178_v18, %v252_v30 }
  0x88   :  { %v59_v22 = vadd.f32 %v1184_v21, %v52_v20 }
  0x89   :  { %v161_v36 = vpop.permute.xlu0 %160  ;;  %v255_v50 = vadd.f32 %v1184_v21, %v254_v49 }
  0x8a   :  { %v343_v31 = vpop.permute.xlu1 %342  ;;  %v163_v37 = vmul.f32 %v1178_v18, %v161_v36 }
  0x8b   :  { %v345_v59 = vmul.f32 %v1178_v18, %v343_v31 }
  0x8c   :  { %v164_v38 = vadd.f32 %v1184_v21, %v163_v37 }
  0x8d   :  { %v434_v45 = vpop.permute.xlu0 %433  ;;  %v346_v60 = vadd.f32 %v1184_v21, %v345_v59 }
  0x8e   :  { %v1201_v32 = vpop.permute.xlu1 %524  ;;  %v436_v8 = vmul.f32 %v1178_v18, %v434_v45 }
  0x90   :  { %v437_v9 = vadd.f32 %v1184_v21, %v436_v8 }
  0x91   :  { %v1221_v46 = vpop.permute.xlu0 %615 }
  0xe0   :  { %v130_v23 = vpop.f32.mrb[0].mxu0 }
  0xe1   :  { %v134_v24 = vadd.f32 %v130_v23, %v59_v22  ;;  %v888_v25 = vpop.f32.mrb[1].mxu0 }
  0xe2   :  { %v835_v25 = vld [vmem:[%s1321_s0 + $0xe] sm:$0x3] }
  0xe3   :  { %1021 = vtanh.f32 %v134_v24 }
  0xed   :  { %v1022_v27 = vpop.eup %1021 }
  0xee   :  { %898 = vmatmul.mubr.msk.f32.vlgmr.msra.gmra.mrb[0].mxu1 %vm60_vm1, %v1022_v27  ;;  %v142_v28 = vmul.f32 %v1022_v27, %v1190_v26 }
  0xef   :  { %986 = vmatpush3.bf16.msra.mxu1 %v1124_v5  ;;  %919 = vmatprep.mubr.msk.f32.mxu1 %vm1062_vm0, %v1063_v7 }
  0xf0   :  { %v144_v29 = vsel %vm143_vm2, %v142_v28, 0.0  ;;  %987 = vmatprep.subr.bf16.mxu1 %v1061_v4 }
  0xf1   :  { %145 = vadd.xlane.f32.xlu1 %v144_v29  ;;  %v618_v29 = vmul.f32 %v1178_v18, %v1221_v46 }
  0xf3   :  { %989 = vmatpush3.bf16.msra.mxu1 %v1135_v10  ;;  %v619_v30 = vadd.f32 %v1184_v21, %v618_v29 }
  0xf4   :  { %996 = vmatprep.subr.bf16.mxu1 %v1061_v4 }
 0x17e   :  { %v146_v34 = vpop.xlane.xlu1 %145 }
 0x17f   :  { %v153_v35 = vadd.f32 %v1203_v33, %v146_v34 }
 0x181   :  { %155 = vst.msk [vmem:[%s1328_s7] sm:$0x3] %vm154_vm3, %v153_v35 }
 0x1c1   :  { %v234_v39 = vpop.f32.mrb[0].mxu1 }
 0x1c2   :  { %v238_v40 = vadd.f32 %v234_v39, %v164_v38  ;;  %v899_v41 = vpop.f32.mrb[1].mxu1 }
 0x1c4   :  { %1023 = vtanh.f32 %v238_v40 }
 0x1ce   :  { %v1024_v42 = vpop.eup %1023 }
 0x1cf   :  { %909 = vmatmul.mubr.msk.f32.vlgmr.msra.gmra.mrb[2].mxu0 %vm60_vm1, %v1024_v42  ;;  %v240_v43 = vmul.f32 %v1024_v42, %v1190_v26 }
 0x1d0   :  { %992 = vmatpush3.bf16.msra.mxu0 %v1124_v5  ;;  %930 = vmatprep.mubr.msk.f32.mxu0 %vm1062_vm0, %v1063_v7 }
 0x1d1   :  { %v241_v44 = vsel %vm143_vm2, %v240_v43, 0.0  ;;  %993 = vmatprep.subr.bf16.mxu0 %v1061_v4 }
 0x1d2   :  { %242 = vadd.xlane.f32.xlu0 %v241_v44 }
 0x1d4   :  { %995 = vmatpush3.bf16.msra.mxu0 %v1135_v10 }
 0x1d5   :  { %1002 = vmatprep.subr.bf16.mxu0 %v1061_v4 }
 0x25f   :  { %v243_v47 = vpop.xlane.xlu0 %242 }
 0x260   :  { %v244_v48 = vadd.f32 %v1203_v33, %v243_v47 }
 0x262   :  { %819 = vst.msk [vmem:[%s1328_s7 + $0x2] sm:$0x3] %vm154_vm3, %v244_v48 }
 0x2a2   :  { %v325_v51 = vpop.f32.mrb[2].mxu0 }
 0x2a3   :  { %v329_v52 = vadd.f32 %v325_v51, %v255_v50  ;;  %v910_v53 = vpop.f32.mrb[3].mxu0 }
 0x2a5   :  { %1025 = vtanh.f32 %v329_v52 }
 0x2af   :  { %v1026_v54 = vpop.eup %1025 }
 0x2b0   :  { %920 = vmatmul.mubr.msk.f32.vlgmr.msra.gmra.mrb[2].mxu1 %vm60_vm1, %v1026_v54  ;;  %v331_v55 = vmul.f32 %v1026_v54, %v1190_v26 }
 0x2b1   :  { %998 = vmatpush3.bf16.msra.mxu1 %v1124_v5  ;;  %941 = vmatprep.mubr.msk.f32.mxu1 %vm1062_vm0, %v1063_v7 }
 0x2b2   :  { %v332_v56 = vsel %vm143_vm2, %v331_v55, 0.0  ;;  %999 = vmatprep.subr.bf16.mxu1 %v1061_v4 }
 0x2b3   :  { %333 = vadd.xlane.f32.xlu0 %v332_v56 }
 0x2b5   :  { %1001 = vmatpush3.bf16.msra.mxu1 %v1135_v10 }
 0x2b6   :  { %1008 = vmatprep.subr.bf16.mxu1 %v1061_v4 }
 0x340   :  { %v334_v57 = vpop.xlane.xlu0 %333 }
 0x341   :  { %v335_v58 = vadd.f32 %v1203_v33, %v334_v57 }
 0x343   :  { %822 = vst.msk [vmem:[%s1328_s7 + $0x4] sm:$0x3] %vm154_vm3, %v335_v58 }
 0x383   :  { %v416_v61 = vpop.f32.mrb[2].mxu1 }
 0x384   :  { %v420_v62 = vadd.f32 %v416_v61, %v346_v60  ;;  %v921_v63 = vpop.f32.mrb[3].mxu1 }
 0x386   :  { %1027 = vtanh.f32 %v420_v62 }
 0x390   :  { %v1028_v0 = vpop.eup %1027 }
 0x391   :  { %931 = vmatmul.mubr.msk.f32.vlgmr.msra.gmra.mrb[4].mxu0 %vm60_vm1, %v1028_v0  ;;  %v422_v1 = vmul.f32 %v1028_v0, %v1190_v26 }
 0x392   :  { %1004 = vmatpush3.bf16.msra.mxu0 %v1124_v5  ;;  %952 = vmatprep.mubr.msk.f32.mxu0 %vm1062_vm0, %v1063_v7 }
 0x393   :  { %v423_v2 = vsel %vm143_vm2, %v422_v1, 0.0  ;;  %1005 = vmatprep.subr.bf16.mxu0 %v1061_v4 }
 0x394   :  { %424 = vadd.xlane.f32.xlu1 %v423_v2 }
 0x396   :  { %1007 = vmatpush3.bf16.msra.mxu0 %v1135_v10 }
 0x421   :  { %v425_v3 = vpop.xlane.xlu1 %424 }
 0x422   :  { %v426_v6 = vadd.f32 %v1203_v33, %v425_v3 }
 0x424   :  { %825 = vst.msk [vmem:[%s1328_s7 + $0x6] sm:$0x3] %vm154_vm3, %v426_v6 }
 0x464   :  { %v507_v11 = vpop.f32.mrb[4].mxu0 }
 0x465   :  { %v511_v12 = vadd.f32 %v507_v11, %v437_v9  ;;  %v932_v13 = vpop.f32.mrb[5].mxu0 }
 0x467   :  { %1029 = vtanh.f32 %v511_v12 }
 0x471   :  { %v1030_v14 = vpop.eup %1029 }
 0x472   :  { %942 = vmatmul.mubr.msk.f32.vlgmr.msra.gmra.mrb[4].mxu1 %vm60_vm1, %v1030_v14  ;;  %v513_v15 = vmul.f32 %v1030_v14, %v1190_v26 }
 0x473   :  { %1010 = vmatpush3.bf16.msra.mxu1 %v1124_v5  ;;  %963 = vmatprep.mubr.msk.f32.mxu1 %vm1062_vm0, %v1063_v7  ;;  %v527_v5 = vmul.f32 %v1178_v18, %v1201_v32 }
 0x474   :  { %v514_v16 = vsel %vm143_vm2, %v513_v15, 0.0  ;;  %1011 = vmatprep.subr.bf16.mxu1 %v1061_v4 }
 0x475   :  { %515 = vadd.xlane.f32.xlu0 %v514_v16  ;;  %v528_v7 = vadd.f32 %v1184_v21, %v527_v5 }
 0x477   :  { %1013 = vmatpush3.bf16.msra.mxu1 %v1135_v10 }
 0x502   :  { %v516_v17 = vpop.xlane.xlu0 %515 }
 0x503   :  { %v517_v19 = vadd.f32 %v1203_v33, %v516_v17 }
 0x505   :  { %828 = vst.msk [vmem:[%s1328_s7 + $0x8] sm:$0x3] %vm154_vm3, %v517_v19 }
 0x545   :  { %v598_v20 = vpop.f32.mrb[4].mxu1 }
 0x546   :  { %v602_v22 = vadd.f32 %v598_v20, %v528_v7  ;;  %v943_v23 = vpop.f32.mrb[5].mxu1 }
 0x548   :  { %1031 = vtanh.f32 %v602_v22 }
 0x552   :  { %v1032_v4 = vpop.eup %1031 }
 0x553   :  { %953 = vmatmul.mubr.msk.f32.vlgmr.msra.gmra.mrb[6].mxu0 %vm60_vm1, %v1032_v4  ;;  %v604_v10 = vmul.f32 %v1032_v4, %v1190_v26 }
 0x555   :  { %v605_v24 = vsel %vm143_vm2, %v604_v10, 0.0 }
 0x556   :  { %606 = vadd.xlane.f32.xlu1 %v605_v24 }
 0x567   :  { %706 = vperm.xlu1 %1020, %v835_v25  }
 0x5e3   :  { %v607_v27 = vpop.xlane.xlu1 %606 }
 0x5e4   :  { %v608_v28 = vadd.f32 %v1203_v33, %v607_v27 }
 0x5e6   :  { %831 = vst.msk [vmem:[%s1328_s7 + $0xa] sm:$0x3] %vm154_vm3, %v608_v28 }
 0x5e7   :  { %v707_v40 = vpop.permute.xlu1 %706 }
 0x5e8   :  { %v709_v41 = vmul.f32 %v1178_v18, %v707_v40 }
 0x5ea   :  { %v710_v42 = vadd.f32 %v1184_v21, %v709_v41 }
 0x626   :  { %v689_v31 = vpop.f32.mrb[6].mxu0 }
 0x627   :  { %v693_v32 = vadd.f32 %v689_v31, %v619_v30  ;;  %v954_v34 = vpop.f32.mrb[7].mxu0 }
 0x629   :  { %1033 = vtanh.f32 %v693_v32 }
 0x633   :  { %v1034_v35 = vpop.eup %1033 }
 0x634   :  { %964 = vmatmul.mubr.msk.f32.vlgmr.msra.gmra.mrb[6].mxu1 %vm60_vm1, %v1034_v35  ;;  %v695_v36 = vmul.f32 %v1034_v35, %v1190_v26 }
 0x636   :  { %v696_v37 = vsel %vm143_vm2, %v695_v36, 0.0 }
 0x637   :  { %697 = vadd.xlane.f32.xlu0 %v696_v37 }
 0x6c4   :  { %v698_v38 = vpop.xlane.xlu0 %697 }
 0x6c5   :  { %v699_v39 = vadd.f32 %v1203_v33, %v698_v38 }
 0x6c7   :  { %834 = vst.msk [vmem:[%s1328_s7 + $0xc] sm:$0x3] %vm154_vm3, %v699_v39 }
 0x707   :  { %v780_v43 = vpop.f32.mrb[6].mxu1 }
 0x708   :  { %v784_v44 = vadd.f32 %v780_v43, %v710_v42  ;;  %v965_v45 = vpop.f32.mrb[7].mxu1 }
 0x70a   :  { %1035 = vtanh.f32 %v784_v44 }
 0x714   :  { %v1036_v46 = vpop.eup %1035 }
 0x715   :  { %793 = vst.msk [vmem:[#allocation3] sm:$0x3] %vm143_vm2, %v1036_v46  ;;  %v786_v47 = vmul.f32 %v1036_v46, %v1190_v26 }
 0x717   :  { %v787_v48 = vsel %vm143_vm2, %v786_v47, 0.0 }
 0x718   :  { %788 = vadd.xlane.f32.xlu0 %v787_v48 }
 0x719   :  { %1048 = shalt.err (!%p1045_p4)
}
 0x71a   :  { %s1049_s1 = scalar_lea.hbm %s1329_s8, 32 }
 0x71b   :  { %p1050_p5 = scmp.ne.s32.totalorder %s1329_s8, %s1049_s1  ;;  %p1053_p6 = scmp.lt.u32.totalorder %s1049_s1, %s1329_s8 }
 0x71d   :  { %p1055_p7 = pnand %p1053_p6, %p1050_p5 }
 0x71f   :  { %1058 = shalt.err (!%p1055_p7)
}
 0x720   :  { %805 = dma.vmem_to_hbm [thread:$0]  %s803_s23, 32, %s1329_s8, [#allocation4]  }
 0x7a5   :  { %v789_v18 = vpop.xlane.xlu0 %788 }
 0x7a6   :  { %v790_v21 = vadd.f32 %v1203_v33, %v789_v18 }
 0x7a8   :  { %837 = vst.msk [vmem:[%s1328_s7 + $0xe] sm:$0x3] %vm154_vm3, %v790_v21 }
 0x7a9   :  { %1059 = dma.done.wait [#allocation4], 32  }
 0x7aa   :  { %1060 = vsyncadd [#allocation4], 4294967264 }
 0x7ab   :  { %811 = vsyncpa [#allocation4], 1 }

</bundles_post_ra>
